<compile_context>
chip_gen: v5e
topology: v5e:2x2
jax: 0.10.0
libtpu: 0.0.40
codegen_flags: <defaults>
</compile_context>

<pallas_src>
import functools

import jax
import jax.numpy as jnp
from jax.experimental import pallas as pl
from jax.experimental.pallas import tpu as pltpu


def _round_up(x, m):
    return ((x + m - 1) // m) * m


def _actor_mlp_kernel(ue_ref, drr_ref, w1_ref, b1_ref, gamma_ref, beta_ref,
                      w2_ref, b2_ref, out_ref, *, hidden_dim, mxu_dtype):
    ue = ue_ref[...]                                        # (TB, E)  compute dtype
    drr = drr_ref[...]                                      # (TB, E)
    # Pairwise product computed in f32 (safe on v5e's f32-only VPU), rounded
    # back to the MXU streaming dtype.
    prod = (ue.astype(jnp.float32) * drr.astype(jnp.float32)).astype(mxu_dtype)

    # state = [ue, ue*drr, drr] @ W1 as three accumulating K=E dots against
    # static slabs of the resident W1 (avoids a sub-128-lane concatenate).
    h = jnp.dot(ue.astype(mxu_dtype), w1_ref[0], preferred_element_type=jnp.float32)
    h = h + jnp.dot(prod, w1_ref[1], preferred_element_type=jnp.float32)
    h = h + jnp.dot(drr.astype(mxu_dtype), w1_ref[2], preferred_element_type=jnp.float32)
    h = h + b1_ref[...]                                     # (TB, H_pad) f32

    # LayerNorm over the TRUE hidden width (pad lanes of h are exactly zero
    # because the padded W1 columns and b1 lanes are zero, so the sum is already
    # correct; only the squared-deviation term must be masked).
    h_pad = h.shape[-1]
    inv_h = 1.0 / float(hidden_dim)
    mean = jnp.sum(h, axis=-1, keepdims=True) * inv_h
    diff = h - mean
    if h_pad != hidden_dim:
        lane = jax.lax.broadcasted_iota(jnp.int32, h.shape, dimension=1)
        dev = jnp.where(lane < hidden_dim, diff, 0.0)
    else:
        dev = diff
    var = jnp.sum(dev * dev, axis=-1, keepdims=True) * inv_h
    hn = diff * jax.lax.rsqrt(var + 1e-5) * gamma_ref[...] + beta_ref[...]
    hr = jnp.maximum(hn, 0.0)                               # pad lanes -> 0 (gamma/beta pads are 0)

    # Second Linear: H_pad x E_pad, f32 accumulation, lane-dense (E_pad=128k) store.
    out = jnp.dot(hr.astype(mxu_dtype), w2_ref[...],
                  preferred_element_type=jnp.float32) + b2_ref[...]
    out_ref[...] = out                                      # (TB, E_pad) full-lane f32 store


def _mlp_reference(ue, drr, p):
    state = jnp.concatenate([ue, ue * drr, drr], axis=1)
    h = state @ p["w1"] + p["b1"]
    mean = jnp.mean(h, axis=-1, keepdims=True)
    var = jnp.mean(jnp.square(h - mean), axis=-1, keepdims=True)
    h = (h - mean) * jax.lax.rsqrt(var + 1e-5) * p["gamma"] + p["beta"]
    h = jnp.maximum(h, 0.0)
    return h @ p["w2"] + p["b2"]


def actor_drr_forward(user, memory, params, *, batch_tile=1024,
                      small_batch_threshold=256, use_bf16=False):
    """Glue: embedding gathers + Conv1d pre-reduction in JAX; MLP in Pallas."""
    user_emb = params["user_emb"][user]                     # (B, E) f32
    item_emb = params["item_emb"][memory]                   # (B, M, E) f32
    # Conv1d(in=M, out=1, k=1): drr[b,e] = sum_m w[m]*item_emb[b,m,e] + bias.
    drr = (jnp.einsum("bme,m->be", item_emb, params["conv_w"][0])
           + params["conv_b"][0, 0])                        # (B, E) f32

    B, E = user_emb.shape
    H = params["b1"].shape[-1]

    # Small-batch fallback: RL-inference batches are cheaper as one fused XLA op.
    if B < small_batch_threshold:
        return _mlp_reference(user_emb, drr, params)

    E_pad = _round_up(E, 128)
    H_pad = _round_up(H, 128)
    comp_dtype = jnp.bfloat16 if use_bf16 else jnp.float32

    # ---- Weight preparation (grid-resident, so padding cost is negligible) ----
    w1 = params["w1"].astype(comp_dtype)                    # (3E, H), stored (in, out)
    w1_slabs = jnp.stack([w1[0:E], w1[E:2 * E], w1[2 * E:3 * E]], axis=0)  # (3, E, H)
    w1_slabs = jnp.pad(w1_slabs, ((0, 0), (0, 0), (0, H_pad - H)))
    b1 = jnp.pad(params["b1"].astype(jnp.float32), ((0, 0), (0, H_pad - H)))
    gamma = jnp.pad(params["gamma"].astype(jnp.float32), ((0, 0), (0, H_pad - H)))
    beta = jnp.pad(params["beta"].astype(jnp.float32), ((0, 0), (0, H_pad - H)))
    w2 = jnp.pad(params["w2"].astype(comp_dtype), ((0, H_pad - H), (0, E_pad - E)))
    b2 = jnp.pad(params["b2"].astype(jnp.float32), ((0, 0), (0, E_pad - E)))

    # ---- Batch tiling ----
    # Big tiles amortize per-step overhead; cap at ceil(Bp/2) so there are at
    # least two grid steps (lets the "parallel" axis use both TCs on v7x).
    Bp = _round_up(B, 8)
    TB = min(batch_tile, max(8, _round_up((Bp + 1) // 2, 8)))
    Bp = _round_up(Bp, TB)

    ue_s = user_emb.astype(comp_dtype)
    drr_s = drr.astype(comp_dtype)
    if Bp != B:
        ue_s = jnp.pad(ue_s, ((0, Bp - B), (0, 0)))
        drr_s = jnp.pad(drr_s, ((0, Bp - B), (0, 0)))

    batched = lambda i: (i, 0)       # tile follows the batch grid index
    resident2 = lambda i: (0, 0)     # same block every step -> weights stay in VMEM
    resident3 = lambda i: (0, 0, 0)

    kernel = functools.partial(_actor_mlp_kernel, hidden_dim=H, mxu_dtype=comp_dtype)

    out = pl.pallas_call(
        kernel,
        out_shape=jax.ShapeDtypeStruct((Bp, E_pad), jnp.float32),
        grid=(Bp // TB,),
        in_specs=[
            pl.BlockSpec((TB, E), batched),            # user_emb tile (streamed)
            pl.BlockSpec((TB, E), batched),            # drr tile (streamed)
            pl.BlockSpec((3, E, H_pad), resident3),    # w1 slabs (resident)
            pl.BlockSpec((1, H_pad), resident2),       # b1
            pl.BlockSpec((1, H_pad), resident2),       # gamma
            pl.BlockSpec((1, H_pad), resident2),       # beta
            pl.BlockSpec((H_pad, E_pad), resident2),   # w2 (resident)
            pl.BlockSpec((1, E_pad), resident2),       # b2
        ],
        out_specs=pl.BlockSpec((TB, E_pad), batched),  # lane-dense output block
        compiler_params=pltpu.CompilerParams(
            dimension_semantics=("parallel",),          # batch axis -> 2 TCs on v7x
            vmem_limit_bytes=32 * 1024 * 1024,          # safe on v5e/v6e/v7x (<=48MB)
        ),
    )(ue_s, drr_s, w1_slabs, b1, gamma, beta, w2, b2)
    return out[:B, :E]


def init_params(key, user_num, item_num, embedding_dim, hidden_dim, memory_size):
    E, H, M = embedding_dim, hidden_dim, memory_size
    ks = jax.random.split(key, 8)
    user_emb = 0.01 * jax.random.normal(ks[0], (user_num, E), jnp.float32)
    item_emb = 0.01 * jax.random.normal(ks[1], (item_num + 1, E), jnp.float32)
    # padding_idx row (item_num) -> zero embedding (StateReprModule semantics).
    item_emb = item_emb.at[item_num].set(0.0)
    conv_w = jax.random.uniform(ks[2], (1, M), jnp.float32)      # Conv1d(out=1,in=M,k=1)
    conv_b = jnp.zeros((1, 1), jnp.float32)
    # Linear weights stored transposed: (in, out). Kaiming-uniform-style init.
    bound1 = (6.0 / (3 * E)) ** 0.5
    w1 = jax.random.uniform(ks[3], (3 * E, H), jnp.float32, -bound1, bound1)
    b1 = jax.random.uniform(ks[4], (1, H), jnp.float32,
                            -1.0 / (3 * E) ** 0.5, 1.0 / (3 * E) ** 0.5)
    gamma = jnp.ones((1, H), jnp.float32)
    beta = jnp.zeros((1, H), jnp.float32)
    bound2 = (6.0 / H) ** 0.5
    w2 = jax.random.uniform(ks[5], (H, E), jnp.float32, -bound2, bound2)
    b2 = jax.random.uniform(ks[6], (1, E), jnp.float32,
                            -1.0 / H ** 0.5, 1.0 / H ** 0.5)
    return dict(user_emb=user_emb, item_emb=item_emb, conv_w=conv_w, conv_b=conv_b,
                w1=w1, b1=b1, gamma=gamma, beta=beta, w2=w2, b2=b2)


def reference_forward(user, memory, p):
    """Pure-JAX reference replicating the PyTorch module."""
    ue = p["user_emb"][user]
    ie = p["item_emb"][memory]
    drr = jnp.einsum("bme,m->be", ie, p["conv_w"][0]) + p["conv_b"][0, 0]
    return _mlp_reference(ue, drr, p)


if __name__ == "__main__":
    USER_NUM, ITEM_NUM = 10, 20
    EMB_DIM, HIDDEN_DIM, MEMORY_SIZE = 32, 32, 8

    key = jax.random.PRNGKey(0)
    kp, ku, km = jax.random.split(key, 3)
    params = init_params(kp, USER_NUM, ITEM_NUM, EMB_DIM, HIDDEN_DIM, MEMORY_SIZE)

    # 1) RL-inference-sized batch -> small-batch fallback (pure XLA path).
    B_SMALL = 4
    user_s = jax.random.randint(ku, (B_SMALL,), 0, USER_NUM, dtype=jnp.int32)
    memory_s = jax.random.randint(km, (B_SMALL, MEMORY_SIZE), 0, ITEM_NUM + 1,
                                  dtype=jnp.int32)
    out_s = jax.block_until_ready(actor_drr_forward(user_s, memory_s, params))
    ref_s = reference_forward(user_s, memory_s, params)
    assert out_s.shape == (B_SMALL, EMB_DIM)
    assert jnp.allclose(out_s, ref_s, atol=1e-5, rtol=1e-5), "fallback mismatch"

    # 2) Same tiny batch forced through the Pallas kernel (grid=(1,), TB=8).
    out_k = jax.block_until_ready(
        actor_drr_forward(user_s, memory_s, params, small_batch_threshold=0))
    assert out_k.shape == (B_SMALL, EMB_DIM)
    assert jnp.allclose(out_k, ref_s, atol=1e-5, rtol=1e-5), "kernel (tiny) mismatch"

    # 3) Training/eval-sized batch through the kernel (grid=(2,), TB=256), f32.
    B_BIG = 512
    ku2, km2 = jax.random.split(jax.random.PRNGKey(1))
    user_b = jax.random.randint(ku2, (B_BIG,), 0, USER_NUM, dtype=jnp.int32)
    memory_b = jax.random.randint(km2, (B_BIG, MEMORY_SIZE), 0, ITEM_NUM + 1,
                                  dtype=jnp.int32)
    out_b = jax.block_until_ready(actor_drr_forward(user_b, memory_b, params))
    ref_b = reference_forward(user_b, memory_b, params)
    assert out_b.shape == (B_BIG, EMB_DIM)
    assert jnp.allclose(out_b, ref_b, atol=1e-5, rtol=1e-5), "kernel (f32) mismatch"

    # 4) bf16-streamed variant (halves streamed HBM traffic; f32 accum + LN).
    out_bf = jax.block_until_ready(
        actor_drr_forward(user_b, memory_b, params, use_bf16=True))
    assert out_bf.shape == (B_BIG, EMB_DIM)
    assert jnp.allclose(out_bf, ref_b, atol=5e-2, rtol=5e-2), "kernel (bf16) mismatch"

    print("KERNEL_OK")
</pallas_src>

<mosaic_0001>
module attributes {stable_mosaic.version = 11 : i64} {
  func.func @_actor_mlp_kernel(%arg0: i32, %arg1: memref<8x32xf32, #tpu.memory_space<vmem>>, %arg2: memref<8x32xf32, #tpu.memory_space<vmem>>, %arg3: memref<3x32x128xf32, #tpu.memory_space<vmem>>, %arg4: memref<1x128xf32, #tpu.memory_space<vmem>>, %arg5: memref<1x128xf32, #tpu.memory_space<vmem>>, %arg6: memref<1x128xf32, #tpu.memory_space<vmem>>, %arg7: memref<128x128xf32, #tpu.memory_space<vmem>>, %arg8: memref<1x128xf32, #tpu.memory_space<vmem>>, %arg9: memref<8x128xf32, #tpu.memory_space<vmem>>) attributes {dimension_semantics = [#tpu.dimension_semantics<parallel>], iteration_bounds = array<i64: 1>, scalar_prefetch = 0 : i64, scratch_operands = 0 : i64, tpu.core_type = #tpu.core_type<tc>, window_params = [{transform_indices = @transform_0, window_bounds = array<i64: 8, 32>}, {transform_indices = @transform_1, window_bounds = array<i64: 8, 32>}, {pipeline_mode = #tpu.pipeline_mode<synchronous>, transform_indices = @transform_2, window_bounds = array<i64: 3, 32, 128>}, {pipeline_mode = #tpu.pipeline_mode<synchronous>, transform_indices = @transform_3, window_bounds = array<i64: 1, 128>}, {pipeline_mode = #tpu.pipeline_mode<synchronous>, transform_indices = @transform_4, window_bounds = array<i64: 1, 128>}, {pipeline_mode = #tpu.pipeline_mode<synchronous>, transform_indices = @transform_5, window_bounds = array<i64: 1, 128>}, {pipeline_mode = #tpu.pipeline_mode<synchronous>, transform_indices = @transform_6, window_bounds = array<i64: 128, 128>}, {pipeline_mode = #tpu.pipeline_mode<synchronous>, transform_indices = @transform_7, window_bounds = array<i64: 1, 128>}, {transform_indices = @transform_8, window_bounds = array<i64: 8, 128>}]} {
    %c0 = arith.constant 0 : index
    %c0_0 = arith.constant 0 : index
    %0 = vector.load %arg1[%c0, %c0_0] : memref<8x32xf32, #tpu.memory_space<vmem>>, vector<8x32xf32>
    %c0_1 = arith.constant 0 : index
    %c0_2 = arith.constant 0 : index
    %1 = vector.load %arg2[%c0_1, %c0_2] : memref<8x32xf32, #tpu.memory_space<vmem>>, vector<8x32xf32>
    %2 = arith.mulf %0, %1 : vector<8x32xf32>
    %c0_3 = arith.constant 0 : index
    %c0_4 = arith.constant 0 : index
    %c0_5 = arith.constant 0 : index
    %3 = vector.load %arg3[%c0_3, %c0_4, %c0_5] : memref<3x32x128xf32, #tpu.memory_space<vmem>>, vector<1x32x128xf32>
    %4 = vector.shape_cast %3 : vector<1x32x128xf32> to vector<32x128xf32>
    %cst = arith.constant dense<0.000000e+00> : vector<8x128xf32>
    %5 = tpu.matmul %0, %4, %cst {dimension_numbers = #tpu.dot_dimension_numbers<[1], [0], [0], [1], [0, 0, 1, 1], [], []>} : vector<8x32xf32>, vector<32x128xf32>, vector<8x128xf32> -> vector<8x128xf32>
    %c1 = arith.constant 1 : index
    %c0_6 = arith.constant 0 : index
    %c0_7 = arith.constant 0 : index
    %6 = vector.load %arg3[%c1, %c0_6, %c0_7] : memref<3x32x128xf32, #tpu.memory_space<vmem>>, vector<1x32x128xf32>
    %7 = vector.shape_cast %6 : vector<1x32x128xf32> to vector<32x128xf32>
    %cst_8 = arith.constant dense<0.000000e+00> : vector<8x128xf32>
    %8 = tpu.matmul %2, %7, %cst_8 {dimension_numbers = #tpu.dot_dimension_numbers<[1], [0], [0], [1], [0, 0, 1, 1], [], []>} : vector<8x32xf32>, vector<32x128xf32>, vector<8x128xf32> -> vector<8x128xf32>
    %9 = arith.addf %5, %8 : vector<8x128xf32>
    %c2 = arith.constant 2 : index
    %c0_9 = arith.constant 0 : index
    %c0_10 = arith.constant 0 : index
    %10 = vector.load %arg3[%c2, %c0_9, %c0_10] : memref<3x32x128xf32, #tpu.memory_space<vmem>>, vector<1x32x128xf32>
    %11 = vector.shape_cast %10 : vector<1x32x128xf32> to vector<32x128xf32>
    %cst_11 = arith.constant dense<0.000000e+00> : vector<8x128xf32>
    %12 = tpu.matmul %1, %11, %cst_11 {dimension_numbers = #tpu.dot_dimension_numbers<[1], [0], [0], [1], [0, 0, 1, 1], [], []>} : vector<8x32xf32>, vector<32x128xf32>, vector<8x128xf32> -> vector<8x128xf32>
    %13 = arith.addf %9, %12 : vector<8x128xf32>
    %c0_12 = arith.constant 0 : index
    %c0_13 = arith.constant 0 : index
    %14 = vector.load %arg4[%c0_12, %c0_13] : memref<1x128xf32, #tpu.memory_space<vmem>>, vector<1x128xf32>
    %15 = vector.broadcast %14 : vector<1x128xf32> to vector<8x128xf32>
    %16 = arith.addf %13, %15 : vector<8x128xf32>
    %cst_14 = arith.constant dense<0.000000e+00> : vector<8xf32>
    %17 = vector.multi_reduction <add>, %16, %cst_14 [1] : vector<8x128xf32> to vector<8xf32>
    %18 = vector.shape_cast %17 : vector<8xf32> to vector<8x1xf32>
    %cst_15 = arith.constant 3.125000e-02 : f32
    %19 = vector.broadcast %cst_15 : f32 to vector<8x1xf32>
    %20 = arith.mulf %18, %19 : vector<8x1xf32>
    %21 = vector.broadcast %20 : vector<8x1xf32> to vector<8x128xf32>
    %22 = arith.subf %16, %21 : vector<8x128xf32>
    %23 = tpu.iota {dimensions = array<i32: 1>} : vector<8x128xi32>
    %c32_i32 = arith.constant 32 : i32
    %24 = vector.broadcast %c32_i32 : i32 to vector<8x128xi32>
    %25 = arith.cmpi slt, %23, %24 : vector<8x128xi32>
    %cst_16 = arith.constant 0.000000e+00 : f32
    %26 = vector.broadcast %cst_16 : f32 to vector<8x128xf32>
    %27 = arith.select %25, %22, %26 : vector<8x128xi1>, vector<8x128xf32>
    %28 = arith.mulf %27, %27 : vector<8x128xf32>
    %cst_17 = arith.constant dense<0.000000e+00> : vector<8xf32>
    %29 = vector.multi_reduction <add>, %28, %cst_17 [1] : vector<8x128xf32> to vector<8xf32>
    %30 = vector.shape_cast %29 : vector<8xf32> to vector<8x1xf32>
    %cst_18 = arith.constant 3.125000e-02 : f32
    %31 = vector.broadcast %cst_18 : f32 to vector<8x1xf32>
    %32 = arith.mulf %30, %31 : vector<8x1xf32>
    %cst_19 = arith.constant 9.99999974E-6 : f32
    %33 = vector.broadcast %cst_19 : f32 to vector<8x1xf32>
    %34 = arith.addf %32, %33 : vector<8x1xf32>
    %35 = math.rsqrt %34 : vector<8x1xf32>
    %36 = vector.broadcast %35 : vector<8x1xf32> to vector<8x128xf32>
    %37 = arith.mulf %22, %36 : vector<8x128xf32>
    %c0_20 = arith.constant 0 : index
    %c0_21 = arith.constant 0 : index
    %38 = vector.load %arg5[%c0_20, %c0_21] : memref<1x128xf32, #tpu.memory_space<vmem>>, vector<1x128xf32>
    %39 = vector.broadcast %38 : vector<1x128xf32> to vector<8x128xf32>
    %40 = arith.mulf %37, %39 : vector<8x128xf32>
    %c0_22 = arith.constant 0 : index
    %c0_23 = arith.constant 0 : index
    %41 = vector.load %arg6[%c0_22, %c0_23] : memref<1x128xf32, #tpu.memory_space<vmem>>, vector<1x128xf32>
    %42 = vector.broadcast %41 : vector<1x128xf32> to vector<8x128xf32>
    %43 = arith.addf %40, %42 : vector<8x128xf32>
    %cst_24 = arith.constant 0.000000e+00 : f32
    %44 = vector.broadcast %cst_24 : f32 to vector<8x128xf32>
    %45 = arith.maximumf %43, %44 : vector<8x128xf32>
    %c0_25 = arith.constant 0 : index
    %c0_26 = arith.constant 0 : index
    %46 = vector.load %arg7[%c0_25, %c0_26] : memref<128x128xf32, #tpu.memory_space<vmem>>, vector<128x128xf32>
    %cst_27 = arith.constant dense<0.000000e+00> : vector<8x128xf32>
    %47 = tpu.matmul %45, %46, %cst_27 {dimension_numbers = #tpu.dot_dimension_numbers<[1], [0], [0], [1], [0, 0, 1, 1], [], []>} : vector<8x128xf32>, vector<128x128xf32>, vector<8x128xf32> -> vector<8x128xf32>
    %c0_28 = arith.constant 0 : index
    %c0_29 = arith.constant 0 : index
    %48 = vector.load %arg8[%c0_28, %c0_29] : memref<1x128xf32, #tpu.memory_space<vmem>>, vector<1x128xf32>
    %49 = vector.broadcast %48 : vector<1x128xf32> to vector<8x128xf32>
    %50 = arith.addf %47, %49 : vector<8x128xf32>
    %c0_30 = arith.constant 0 : index
    %c0_31 = arith.constant 0 : index
    %51 = vector.load %arg9[%c0_30, %c0_31] : memref<8x128xf32, #tpu.memory_space<vmem>>, vector<8x128xf32>
    tpu.vector_store %arg9[%c0_30, %c0_31], %50 {strides = array<i32>} : memref<8x128xf32, #tpu.memory_space<vmem>>, vector<8x128xf32>,
    return
  }
  func.func @transform_0(%arg0: i32) -> (i32, i32) {
    %c0_i32 = arith.constant 0 : i32
    %c0_i32_0 = arith.constant 0 : i32
    return %arg0, %c0_i32 : i32, i32
  }
  func.func @transform_1(%arg0: i32) -> (i32, i32) {
    %c0_i32 = arith.constant 0 : i32
    %c0_i32_0 = arith.constant 0 : i32
    return %arg0, %c0_i32 : i32, i32
  }
  func.func @transform_2(%arg0: i32) -> (i32, i32, i32) {
    %c0_i32 = arith.constant 0 : i32
    %c0_i32_0 = arith.constant 0 : i32
    %c0_i32_1 = arith.constant 0 : i32
    %c0_i32_2 = arith.constant 0 : i32
    return %c0_i32, %c0_i32_0, %c0_i32_1 : i32, i32, i32
  }
  func.func @transform_3(%arg0: i32) -> (i32, i32) {
    %c0_i32 = arith.constant 0 : i32
    %c0_i32_0 = arith.constant 0 : i32
    %c0_i32_1 = arith.constant 0 : i32
    return %c0_i32, %c0_i32_0 : i32, i32
  }
  func.func @transform_4(%arg0: i32) -> (i32, i32) {
    %c0_i32 = arith.constant 0 : i32
    %c0_i32_0 = arith.constant 0 : i32
    %c0_i32_1 = arith.constant 0 : i32
    return %c0_i32, %c0_i32_0 : i32, i32
  }
  func.func @transform_5(%arg0: i32) -> (i32, i32) {
    %c0_i32 = arith.constant 0 : i32
    %c0_i32_0 = arith.constant 0 : i32
    %c0_i32_1 = arith.constant 0 : i32
    return %c0_i32, %c0_i32_0 : i32, i32
  }
  func.func @transform_6(%arg0: i32) -> (i32, i32) {
    %c0_i32 = arith.constant 0 : i32
    %c0_i32_0 = arith.constant 0 : i32
    %c0_i32_1 = arith.constant 0 : i32
    return %c0_i32, %c0_i32_0 : i32, i32
  }
  func.func @transform_7(%arg0: i32) -> (i32, i32) {
    %c0_i32 = arith.constant 0 : i32
    %c0_i32_0 = arith.constant 0 : i32
    %c0_i32_1 = arith.constant 0 : i32
    return %c0_i32, %c0_i32_0 : i32, i32
  }
  func.func @transform_8(%arg0: i32) -> (i32, i32) {
    %c0_i32 = arith.constant 0 : i32
    %c0_i32_0 = arith.constant 0 : i32
    return %arg0, %c0_i32 : i32, i32
  }
}

</mosaic_0001>

<bundles_post_ra>
// kernel: tpu_custom_call.1
= control target key start
LH: loop header
LB: loop body
LE: loop exit
PB: predicated region body
PF: predicated region fallthrough
CT: control target
= control target key end

     0   :  { %13 = vsyncpa [#allocation3], 0  ;;  %s500_s0 = inlined_call_operand.hbm [shape: f32[8,32], index: 0, kind: input, shape index: {}]   ;;  %s501_s1 = inlined_call_operand.hbm [shape: f32[8,32], index: 1, kind: input, shape index: {}]   ;;  %s502_s2 = inlined_call_operand.hbm [shape: f32[3,32,128], index: 2, kind: input, shape index: {}]   ;;  %s503_s3 = inlined_call_operand.vmem [shape: f32[1,128], index: 3, kind: input, shape index: {}]   ;;  %s504_s4 = inlined_call_operand.vmem [shape: f32[1,128], index: 4, kind: input, shape index: {}]   ;;  %s505_s5 = inlined_call_operand.vmem [shape: f32[1,128], index: 5, kind: input, shape index: {}]   ;;  %s506_s6 = inlined_call_operand.hbm [shape: f32[128,128], index: 6, kind: input, shape index: {}]   ;;  %s507_s7 = inlined_call_operand.vmem [shape: f32[1,128], index: 7, kind: input, shape index: {}]   ;;  %s508_s8 = inlined_call_operand.hbm [shape: f32[8,128], index: 8, kind: output, shape index: {}]  }
   0x1   :  { %14 = vsyncpa [#allocation6], 0 }
   0x2   :  { %15 = vsyncpa [#allocation9], 0  ;;  %s33_s29 = sshll.u32 %s501_s1, 4  ;;  %s34_s29 = int_to_ptr.hbm [resolvable:$true] %s33_s29 }
   0x3   :  { %16 = vsyncpa [#allocation4], 0  ;;  %s421_s30 = smov [#allocation5]   ;;  %s22_s12 = sshll.u32 %s500_s0, 4  ;;  %s23_s12 = int_to_ptr.hbm [resolvable:$true] %s22_s12 }
   0x4   :  { %s35_s9 = sshll.u32 %s421_s30, 4  ;;  %s422_s13 = smov [#allocation2]   ;;  %s36_s9 = int_to_ptr.vmem [resolvable:$true] %s35_s9 }
   0x5   :  { %38 = dma.hbm_to_vmem [thread:$0]  %s34_s29, 128, %s36_s9, [#allocation6]  }
   0x6   :  { %s24_s14 = sshll.u32 %s422_s13, 4  ;;  %s43_s17 = sshll.u32 %s502_s2, 4  ;;  %s25_s14 = int_to_ptr.vmem [resolvable:$true] %s24_s14  ;;  %s44_s17 = int_to_ptr.hbm [resolvable:$true] %s43_s17 }
   0x7   :  { %27 = dma.hbm_to_vmem [thread:$0]  %s23_s12, 128, %s25_s14, [#allocation3]  }
   0x8   :  { %s423_s1 = smov [#allocation7]   ;;  %s62_s21 = sshll.u32 %s506_s6, 4  ;;  %s63_s21 = int_to_ptr.hbm [resolvable:$true] %s62_s21 }
   0x9   :  { %s45_s18 = sshll.u32 %s423_s1, 4  ;;  %s424_s22 = smov 128   ;;  %s46_s18 = int_to_ptr.vmem [resolvable:$true] %s45_s18 }
   0xa   :  { %s425_s0 = smov 8   ;;  %s426_s23 = smov [#allocation8]  }
   0xb   :  { %51 = dma.hbm_to_vmem [thread:$0]  %s44_s17, 1536, %s46_s18, [#allocation6], %s424_s22, %s424_s22, %s425_s0  }
   0xc   :  { %s64_s24 = sshll.u32 %s426_s23, 4  ;;  %s65_s24 = int_to_ptr.vmem [resolvable:$true] %s64_s24 }
   0xd   :  { %70 = dma.hbm_to_vmem [thread:$0]  %s63_s21, 2048, %s65_s24, [#allocation9], %s424_s22, %s424_s22, %s425_s0  }
   0xe   :  { %413 = dma.done.wait [#allocation3], 128  }
   0xf   :  { %414 = vsyncadd [#allocation3], 4294967168 }
  0x10   :  { %415 = dma.done.wait [#allocation6], 1664  }
  0x11   :  { %416 = vsyncadd [#allocation6], 4294965632 }
  0x12   :  { %417 = dma.done.wait [#allocation9], 2048  }
  0x13   :  { %418 = vsyncadd [#allocation9], 4294965248  ;;  %v152_v0 = vld [vmem:[#allocation7 + $0x58] sm:$0xff]  ;;  %v151_v1 = vld [vmem:[#allocation7 + $0x50] sm:$0xff]  ;;  %vm101_vm0 = vcmask 261120   ;;  %v186_v23 = vlaneseq  ;;  %s427_s30 = smov [#allocation10]  }
  0x14   :  { %v100_v2 = vld [vmem:[#allocation7 + $0x38] sm:$0xff]  ;;  %168 = vmatpush.msra.mxu2 %v152_v0  ;;  %v150_v4 = vld [vmem:[#allocation7 + $0x48] sm:$0xff]  ;;  %v99_v5 = vld [vmem:[#allocation7 + $0x30] sm:$0xff]  ;;  %s263_s9 = sshll.u32 %s427_s30, 4  ;;  %s264_s9 = int_to_ptr.vmem [resolvable:$true] %s263_s9 }
  0x15   :  { %117 = vmatpush.msra.mxu0 %v100_v2  ;;  %v95_v3 = vld [vmem:[#allocation7 + $0x18] sm:$0xff]  ;;  %v94_v6 = vld [vmem:[#allocation7 + $0x10] sm:$0xff]  ;;  %v149_v7 = vld [vmem:[#allocation7 + $0x40] sm:$0xff]  ;;  %v187_v24 = vand.u32 127, %v186_v23 }
  0x16   :  { %140 = vmatpush.msra.mxu1 %v95_v3  ;;  %v89_v8 = vld [vmem:[#allocation2] sm:$0xff]  ;;  %169 = vmatpush.msra.mxu2 %v151_v1  ;;  %v90_v9 = vld [vmem:[#allocation5] sm:$0xff]  ;;  %v98_v10 = vld [vmem:[#allocation7 + $0x28] sm:$0xff] }
  0x17   :  { %118 = vmatpush.msra.mxu0 %v99_v5  ;;  %v93_v11 = vld [vmem:[#allocation7 + $0x8] sm:$0xff]  ;;  %v97_v12 = vld [vmem:[#allocation7 + $0x20] sm:$0xff]  ;;  %v91_v14 = vmul.f32 %v90_v9, %v89_v8  ;;  %v287_v18 = vld [vmem:[%s503_s3] ss:$0 sm:$0xff]  ;;  %vm188_vm1 = vcmp.lt.s32.totalorder %v187_v24, 32 }
  0x18   :  { %141 = vmatpush.msra.mxu1 %v94_v6  ;;  %v92_v13 = vld [vmem:[#allocation7] sm:$0xff]  ;;  %170 = vmatpush.msra.mxu2 %v150_v4  ;;  %v232_v22 = vld [vmem:[#allocation8 + $0x78] sm:$0xff]  ;;  %v231_v30 = vld [vmem:[#allocation8 + $0x70] sm:$0xff] }
  0x19   :  { %119 = vmatpush.msra.mxu0 %v98_v10  ;;  %237 = vmatpush.msra.mxu3 %v232_v22  ;;  %v230_v31 = vld [vmem:[#allocation8 + $0x68] sm:$0xff]  ;;  %v229_v32 = vld [vmem:[#allocation8 + $0x60] sm:$0xff]  ;;  %v228_v33 = vld [vmem:[#allocation8 + $0x58] sm:$0xff] }
  0x1a   :  { %142 = vmatpush.msra.mxu1 %v93_v11  ;;  %171 = vmatpush.msra.mxu2 %v149_v7  ;;  %v227_v34 = vld [vmem:[#allocation8 + $0x50] sm:$0xff]  ;;  %v226_v35 = vld [vmem:[#allocation8 + $0x48] sm:$0xff]  ;;  %v225_v36 = vld [vmem:[#allocation8 + $0x40] sm:$0xff] }
  0x1b   :  { %120 = vmatpush.msra.mxu0 %v97_v12  ;;  %279 = vmatmul.msk.f32.vlgmr.msra.gmra.mxu2 %vm101_vm0, %v90_v9  ;;  %v224_v37 = vld [vmem:[#allocation8 + $0x38] sm:$0xff]  ;;  %v223_v38 = vld [vmem:[#allocation8 + $0x30] sm:$0xff]  ;;  %v222_v39 = vld [vmem:[#allocation8 + $0x28] sm:$0xff] }
  0x1c   :  { %143 = vmatpush.msra.mxu1 %v92_v13  ;;  %277 = vmatmul.msk.f32.vlgmr.msra.gmra.mxu0 %vm101_vm0, %v91_v14  ;;  %v221_v40 = vld [vmem:[#allocation8 + $0x20] sm:$0xff]  ;;  %v220_v41 = vld [vmem:[#allocation8 + $0x18] sm:$0xff]  ;;  %v219_v42 = vld [vmem:[#allocation8 + $0x10] sm:$0xff] }
  0x1d   :  { %278 = vmatmul.msk.f32.vlgmr.msra.gmra.mxu1 %vm101_vm0, %v89_v8  ;;  %238 = vmatpush.msra.mxu3 %v231_v30  ;;  %v218_v43 = vld [vmem:[#allocation8 + $0x8] sm:$0xff]  ;;  %v217_v44 = vld [vmem:[#allocation8] sm:$0xff]  ;;  %v288_v54 = vld [vmem:[%s504_s4] ss:$0 sm:$0xff]  ;;  %s265_s4 = sshll.u32 %s508_s8, 4  ;;  %s266_s4 = int_to_ptr.hbm [resolvable:$true] %s265_s4 }
  0x1e   :  { %v289_v57 = vld [vmem:[%s505_s5] ss:$0 sm:$0xff] }
  0x1f   :  { %239 = vmatpush.msra.mxu3 %v230_v31  ;;  %v290_v61 = vld [vmem:[%s507_s7] ss:$0 sm:$0xff] }
  0x21   :  { %240 = vmatpush.msra.mxu3 %v229_v32 }
  0x23   :  { %241 = vmatpush.msra.mxu3 %v228_v33 }
  0x25   :  { %242 = vmatpush.msra.mxu3 %v227_v34 }
  0x27   :  { %243 = vmatpush.msra.mxu3 %v226_v35 }
  0x29   :  { %244 = vmatpush.msra.mxu3 %v225_v36 }
  0x2b   :  { %245 = vmatpush.msra.mxu3 %v224_v37 }
  0x2d   :  { %246 = vmatpush.msra.mxu3 %v223_v38 }
  0x2f   :  { %247 = vmatpush.msra.mxu3 %v222_v39 }
  0x31   :  { %248 = vmatpush.msra.mxu3 %v221_v40 }
  0x33   :  { %249 = vmatpush.msra.mxu3 %v220_v41 }
  0x35   :  { %250 = vmatpush.msra.mxu3 %v219_v42 }
  0x37   :  { %251 = vmatpush.msra.mxu3 %v218_v43 }
  0x39   :  { %252 = vmatpush.msra.mxu3 %v217_v44 }
  0x99   :  { %v122_v15 = vpop.f32.mrf.mxu0 }
  0x9a   :  { %v145_v16 = vpop.f32.mrf.mxu1 }
  0x9b   :  { %v146_v17 = vadd.f32 %v145_v16, %v122_v15 }
  0x9e   :  { %v173_v19 = vpop.f32.mrf.mxu2 }
  0x9f   :  { %v176_v20 = vadd.f32 %v173_v19, %v146_v17 }
  0xa1   :  { %v181_v21 = vadd.f32 %v287_v18, %v176_v20 }
  0xa3   :  { %182 = vadd.xlane.f32.xlu0 %v181_v21 }
 0x116   :  { %v183_v25 = vpop.xlane.xlu0 %182 }
 0x117   :  { %v184_v26 = vmul.f32 0.03125, %v183_v25 }
 0x119   :  { %v185_v27 = vsub.f32 %v181_v21, %v184_v26 }
 0x11b   :  { %v189_v28 = vsel %vm188_vm1, %v185_v27, 0.0 }
 0x11c   :  { %v190_v29 = vmul.f32 %v189_v28, %v189_v28 }
 0x11e   :  { %191 = vadd.xlane.f32.xlu0 %v190_v29 }
 0x191   :  { %v192_v45 = vpop.xlane.xlu0 %191 }
 0x192   :  { %v193_v46 = vmul.f32 0.03125, %v192_v45 }
 0x194   :  { %v194_v47 = vadd.f32 1e-05, %v193_v46 }
 0x196   :  { %291 = vrsqrt.f32 %v194_v47  ;;  %vm201_vm3 = vweird.f32 %v194_v47 }
 0x19c   :  { %v292_v48 = vpop.eup %291 }
 0x19d   :  { %v196_v49 = vmul.f32 %v292_v48, %v194_v47  ;;  %vm202_vm2 = vweird.f32 %v292_v48 }
 0x19e   :  { %vm203_vm4 = vmor %vm201_vm3, %vm202_vm2 }
 0x19f   :  { %v197_v50 = vmul.f32 %v292_v48, %v196_v49 }
 0x1a1   :  { %v198_v51 = vmul.f32 0.5, %v197_v50 }
 0x1a3   :  { %v199_v52 = vsub.f32 1.5, %v198_v51 }
 0x1a5   :  { %v200_v53 = vmul.f32 %v292_v48, %v199_v52 }
 0x1a7   :  { %v204_v55 = vsel %vm203_vm4, %v292_v48, %v200_v53 }
 0x1a8   :  { %v205_v56 = vmul.f32 %v204_v55, %v185_v27 }
 0x1aa   :  { %v210_v58 = vmul.f32 %v288_v54, %v205_v56 }
 0x1ac   :  { %v215_v59 = vadd.f32 %v289_v57, %v210_v58 }
 0x1ae   :  { %v216_v60 = vmax.f32 %v215_v59, 0.0 }
 0x1b0   :  { %253 = vmatmul.f32.vlgmr.msra.gmra.mxu3 %v216_v60 }
 0x233   :  { %v254_v62 = vpop.f32.mrf.mxu3 }
 0x234   :  { %v255_v63 = vadd.f32 %v290_v61, %v254_v62 }
 0x236   :  { %257 = vst [vmem:[#allocation10] sm:$0xff] %v255_v63 }
 0x237   :  { %268 = dma.vmem_to_hbm [thread:$0]  %s264_s9, 128, %s266_s4, [#allocation4]  }
 0x238   :  { %419 = dma.done.wait [#allocation4], 128  }
 0x239   :  { %420 = vsyncadd [#allocation4], 4294967168 }
 0x23a   :  { %273 = vsyncpa [#allocation3], 1 }
 0x23b   :  { %274 = vsyncpa [#allocation6], 1 }
 0x23c   :  { %275 = vsyncpa [#allocation9], 1 }
 0x23d   :  { %276 = vsyncpa [#allocation4], 1 }

</bundles_post_ra>
